<compile_context>
chip_gen: v7x
topology: tpu7x:2x2x1
jax: 0.10.0
libtpu: 0.0.40
codegen_flags: <defaults>
</compile_context>

<pallas_src>
import jax
import jax.numpy as jnp
from jax.experimental import pallas as pl
from jax.experimental.pallas import tpu as pltpu


def _mape_kernel(forecast_ref, target_ref, mask_ref, out_ref):
    f = forecast_ref[...].astype(jnp.float32)
    t = target_ref[...].astype(jnp.float32)
    m = mask_ref[...].astype(jnp.float32)

    # divide_no_nan(mask, target): NaN and +inf are replaced by 0 (mirrors the
    # torch helper exactly; -inf is intentionally left alone, as in torch).
    w = m / t
    w = jnp.where(jnp.isnan(w) | (w == jnp.inf), 0.0, w)

    partial = jnp.sum(jnp.abs((f - t) * w))

    # Lane-dense (1, 8, 128) output tile per grid step: broadcast the scalar
    # partial sum; the wrapper reads [i, 0, 0] and reduces across blocks.
    out_ref[...] = jnp.full(out_ref.shape, partial, dtype=out_ref.dtype)


def mape_loss(insample, freq, forecast, target, mask, *, block_rows=512):
    """Pallas implementation of mape_loss.forward.  Returns a scalar float32."""
    del insample, freq  # MAPE does not use the insample history or frequency.

    B, T = forecast.shape

    # Row-tile selection: a single full-extent block when the batch is small
    # (full-dim block shapes are always legal); otherwise a multiple-of-8 tile
    # so the (8, 128) BlockSpec constraint holds on the sublane dim.
    if B <= block_rows:
        tb = B
    else:
        tb = max(8, (block_rows // 8) * 8)

    num_blocks = pl.cdiv(B, tb)
    padded_b = num_blocks * tb
    if padded_b != B:
        pad = ((0, padded_b - B), (0, 0))
        # Padded rows: mask=0, target=0 -> weight = 0/0 = NaN -> 0, so they
        # contribute exactly 0 to the partial sums.
        forecast = jnp.pad(forecast, pad)
        target = jnp.pad(target, pad)
        mask = jnp.pad(mask, pad)

    itemsize = jnp.dtype(forecast.dtype).itemsize
    cost = pl.CostEstimate(
        flops=9 * padded_b * T,
        transcendentals=0,
        bytes_accessed=3 * padded_b * T * itemsize + num_blocks * 8 * 128 * 4,
    )

    in_spec = pl.BlockSpec((tb, T), lambda i: (i, 0))
    partials = pl.pallas_call(
        _mape_kernel,
        out_shape=jax.ShapeDtypeStruct((num_blocks, 8, 128), jnp.float32),
        grid=(num_blocks,),
        in_specs=[in_spec, in_spec, in_spec],
        out_specs=pl.BlockSpec((1, 8, 128), lambda i: (i, 0, 0)),
        compiler_params=pltpu.CompilerParams(
            dimension_semantics=("parallel",),
        ),
        cost_estimate=cost,
    )(forecast, target, mask)

    # Mean over the ORIGINAL element count (mask only weights, it does not
    # change the denominator — same as torch.mean).
    return jnp.sum(partials[:, 0, 0]) / (B * T)


def mape_loss_ref(insample, freq, forecast, target, mask):
    """Pure-JAX reference mirroring the PyTorch forward exactly."""
    del insample, freq
    weights = mask / target
    weights = jnp.where(jnp.isnan(weights) | (weights == jnp.inf), 0.0, weights)
    return jnp.mean(jnp.abs((forecast - target) * weights))


if __name__ == "__main__":
    key = jax.random.PRNGKey(0)
    k1, k2, k3, k4 = jax.random.split(key, 4)

    # Small shapes consistent with the module: (batch, time).
    B, T_IN, T_OUT, FREQ = 4, 64, 16, 3
    insample = jax.random.normal(k1, (B, T_IN), dtype=jnp.float32)
    forecast = jax.random.normal(k2, (B, T_OUT), dtype=jnp.float32)
    target = jax.random.normal(k3, (B, T_OUT), dtype=jnp.float32)
    mask = (jax.random.uniform(k4, (B, T_OUT)) > 0.3).astype(jnp.float32)

    loss = mape_loss(insample, FREQ, forecast, target, mask)
    jax.block_until_ready(loss)
    ref = mape_loss_ref(insample, FREQ, forecast, target, mask)
    assert jnp.allclose(loss, ref, rtol=1e-5, atol=1e-6), (loss, ref)

    # Multi-block path: batch not a multiple of the row tile (exercises the
    # tiled grid, padding, and the divide_no_nan zero/NaN handling).
    k5, k6, k7, k8 = jax.random.split(jax.random.PRNGKey(1), 4)
    B2, T2 = 40, 24
    insample2 = jax.random.normal(k5, (B2, 96), dtype=jnp.float32)
    forecast2 = jax.random.normal(k6, (B2, T2), dtype=jnp.float32)
    target2 = jax.random.normal(k7, (B2, T2), dtype=jnp.float32)
    target2 = target2.at[0, 0].set(0.0).at[3, 5].set(0.0)  # mask/0 -> inf -> 0
    mask2 = (jax.random.uniform(k8, (B2, T2)) > 0.5).astype(jnp.float32)
    mask2 = mask2.at[3, 5].set(0.0)  # 0/0 -> NaN -> 0

    loss2 = mape_loss(insample2, FREQ, forecast2, target2, mask2, block_rows=16)
    jax.block_until_ready(loss2)
    ref2 = mape_loss_ref(insample2, FREQ, forecast2, target2, mask2)
    assert jnp.allclose(loss2, ref2, rtol=1e-5, atol=1e-6), (loss2, ref2)

    print("KERNEL_OK")
</pallas_src>

<mosaic_0001>
module attributes {stable_mosaic.version = 11 : i64} {
  func.func @_mape_kernel(%arg0: i32, %arg1: memref<4x16xf32, #tpu.memory_space<vmem>>, %arg2: memref<4x16xf32, #tpu.memory_space<vmem>>, %arg3: memref<4x16xf32, #tpu.memory_space<vmem>>, %arg4: memref<1x8x128xf32, #tpu.memory_space<vmem>>) attributes {dimension_semantics = [#tpu.dimension_semantics<parallel>], iteration_bounds = array<i64: 1>, scalar_prefetch = 0 : i64, scratch_operands = 0 : i64, tpu.core_type = #tpu.core_type<tc>, window_params = [{transform_indices = @transform_0, window_bounds = array<i64: 4, 16>}, {transform_indices = @transform_1, window_bounds = array<i64: 4, 16>}, {transform_indices = @transform_2, window_bounds = array<i64: 4, 16>}, {transform_indices = @transform_3, window_bounds = array<i64: 1, 8, 128>}]} {
    %c0 = arith.constant 0 : index
    %c0_0 = arith.constant 0 : index
    %0 = vector.load %arg1[%c0, %c0_0] : memref<4x16xf32, #tpu.memory_space<vmem>>, vector<4x16xf32>
    %c0_1 = arith.constant 0 : index
    %c0_2 = arith.constant 0 : index
    %1 = vector.load %arg2[%c0_1, %c0_2] : memref<4x16xf32, #tpu.memory_space<vmem>>, vector<4x16xf32>
    %c0_3 = arith.constant 0 : index
    %c0_4 = arith.constant 0 : index
    %2 = vector.load %arg3[%c0_3, %c0_4] : memref<4x16xf32, #tpu.memory_space<vmem>>, vector<4x16xf32>
    %3 = arith.divf %2, %1 : vector<4x16xf32>
    %4 = arith.cmpf one, %3, %3 : vector<4x16xf32>
    %cst = arith.constant 0x7F800000 : f32
    %5 = vector.broadcast %cst : f32 to vector<4x16xf32>
    %6 = arith.cmpf oeq, %3, %5 : vector<4x16xf32>
    %7 = arith.ori %4, %6 : vector<4x16xi1>
    %cst_5 = arith.constant 0.000000e+00 : f32
    %8 = vector.broadcast %cst_5 : f32 to vector<4x16xf32>
    %9 = arith.select %7, %8, %3 : vector<4x16xi1>, vector<4x16xf32>
    %10 = arith.subf %0, %1 : vector<4x16xf32>
    %11 = arith.mulf %10, %9 : vector<4x16xf32>
    %12 = math.absf %11 : vector<4x16xf32>
    %13 = vector.shape_cast %12 : vector<4x16xf32> to vector<1x4x16xf32>
    %cst_6 = arith.constant dense<0.000000e+00> : vector<1xf32>
    %14 = vector.multi_reduction <add>, %13, %cst_6 [1, 2] : vector<1x4x16xf32> to vector<1xf32>
    %15 = vector.shape_cast %14 : vector<1xf32> to vector<1x1x1xf32>
    %16 = vector.extract %15[0, 0, 0] : f32 from vector<1x1x1xf32>
    %17 = vector.broadcast %16 : f32 to vector<1x8x128xf32>
    %c0_7 = arith.constant 0 : index
    %c0_8 = arith.constant 0 : index
    %c0_9 = arith.constant 0 : index
    %18 = vector.load %arg4[%c0_7, %c0_8, %c0_9] : memref<1x8x128xf32, #tpu.memory_space<vmem>>, vector<1x8x128xf32>
    tpu.vector_store %arg4[%c0_7, %c0_8, %c0_9], %17 {strides = array<i32>} : memref<1x8x128xf32, #tpu.memory_space<vmem>>, vector<1x8x128xf32>,
    return
  }
  func.func @transform_0(%arg0: i32) -> (i32, i32) {
    %c0_i32 = arith.constant 0 : i32
    %c0_i32_0 = arith.constant 0 : i32
    return %arg0, %c0_i32 : i32, i32
  }
  func.func @transform_1(%arg0: i32) -> (i32, i32) {
    %c0_i32 = arith.constant 0 : i32
    %c0_i32_0 = arith.constant 0 : i32
    return %arg0, %c0_i32 : i32, i32
  }
  func.func @transform_2(%arg0: i32) -> (i32, i32) {
    %c0_i32 = arith.constant 0 : i32
    %c0_i32_0 = arith.constant 0 : i32
    return %arg0, %c0_i32 : i32, i32
  }
  func.func @transform_3(%arg0: i32) -> (i32, i32, i32) {
    %c0_i32 = arith.constant 0 : i32
    %c0_i32_0 = arith.constant 0 : i32
    %c0_i32_1 = arith.constant 0 : i32
    return %arg0, %c0_i32, %c0_i32_0 : i32, i32, i32
  }
}

</mosaic_0001>

<bundles_post_ra>
// kernel: tpu_custom_call.1
= control target key start
LH: loop header
LB: loop body
LE: loop exit
PB: predicated region body
PF: predicated region fallthrough
CT: control target
= control target key end

     0   :  { %8 = vsyncpa [#allocation3], 0  ;;  %s221_s0 = inlined_call_operand.hbm [shape: f32[4,16], index: 0, kind: input, shape index: {}]   ;;  %s222_s1 = inlined_call_operand.hbm [shape: f32[4,16], index: 1, kind: input, shape index: {}]   ;;  %s223_s2 = inlined_call_operand.vmem [shape: f32[4,16], index: 2, kind: input, shape index: {}]   ;;  %s224_s3 = inlined_call_operand.hbm [shape: f32[1,8,128], index: 3, kind: output, shape index: {}]  }
   0x1   :  { %9 = vsyncpa [#allocation6], 0 }
   0x2   :  { %10 = vsyncpa [#allocation4], 0  ;;  %s159_s12 = smov [#allocation2]   ;;  %s160_s14 = smov [#allocation5]  }
   0x3   :  { %s17_s13 = sshll.u32 %s159_s12, 4  ;;  %s27_s15 = sshll.u32 %s160_s14, 4  ;;  %s18_s13 = int_to_ptr.vmem [resolvable:$true] %s17_s13  ;;  %s28_s15 = int_to_ptr.vmem [resolvable:$true] %s27_s15 }
   0x4   :  { %s87_s18 = scalar_lea.hbm %s221_s0, 64 }
   0x5   :  { %p88_p0 = scmp.ne.s32.totalorder %s221_s0, %s87_s18  ;;  %p91_p1 = scmp.lt.u32.totalorder %s87_s18, %s221_s0 }
   0x7   :  { %p93_p2 = pnand %p91_p1, %p88_p0 }
   0x9   :  { %96 = shalt.err (!%p93_p2)
}
   0xa   :  { %s97_s23 = scalar_lea.vmem %s18_s13, 64  ;;  %p102_p4 = scmp.lt.s32.totalorder %s18_s13, %s18_s13 }
   0xb   :  { %p98_p3 = scmp.ne.s32.totalorder %s18_s13, %s97_s23  ;;  %p103_p5 = scmp.lt.s32.totalorder %s97_s23, %s97_s23 }
   0xd   :  { %p104_p6 = por %p103_p5, %p102_p4 }
   0xf   :  { %p105_p7 = pnand %p104_p6, %p98_p3 }
  0x11   :  { %108 = shalt.err (!%p105_p7)
}
  0x12   :  { %20 = dma.hbm_to_vmem [thread:$0]  %s221_s0, 64, %s18_s13, [#allocation3]  }
  0x13   :  { %s109_s28 = scalar_lea.hbm %s222_s1, 64 }
  0x14   :  { %p110_p8 = scmp.ne.s32.totalorder %s222_s1, %s109_s28  ;;  %p113_p9 = scmp.lt.u32.totalorder %s109_s28, %s222_s1 }
  0x16   :  { %p115_p10 = pnand %p113_p9, %p110_p8 }
  0x18   :  { %118 = shalt.err (!%p115_p10)
}
  0x19   :  { %s119_s6 = scalar_lea.vmem %s28_s15, 64  ;;  %p124_p12 = scmp.lt.s32.totalorder %s28_s15, %s28_s15 }
  0x1a   :  { %p120_p11 = scmp.ne.s32.totalorder %s28_s15, %s119_s6  ;;  %p125_p13 = scmp.lt.s32.totalorder %s119_s6, %s119_s6 }
  0x1c   :  { %p126_p0 = por %p125_p13, %p124_p12 }
  0x1e   :  { %p127_p1 = pnand %p126_p0, %p120_p11 }
  0x20   :  { %130 = shalt.err (!%p127_p1)
}
  0x21   :  { %30 = dma.hbm_to_vmem [thread:$0]  %s222_s1, 64, %s28_s15, [#allocation6]  }
  0x22   :  { %153 = dma.done.wait [#allocation3], 64  }
  0x23   :  { %154 = vsyncadd [#allocation3], 4294967232 }
  0x24   :  { %155 = dma.done.wait [#allocation6], 64  }
  0x25   :  { %156 = vsyncadd [#allocation6], 4294967232  ;;  %v40_v0 = vld [vmem:[#allocation5] sm:$0xf]  ;;  %v41_v1 = vld [vmem:[%s223_s2] sm:$0xf] }
  0x26   :  { %85 = vrcp.f32 %v40_v0  ;;  %v39_v2 = vld [vmem:[#allocation2] sm:$0xf]  ;;  %vm51_vm3 = vcmask 125952   ;;  %s161_s1 = smov [#allocation7]  }
  0x27   :  { %v48_v5 = vsub.f32 %v39_v2, %v40_v0  ;;  %s70_s2 = sshll.u32 %s161_s1, 4  ;;  %s71_s2 = int_to_ptr.vmem [resolvable:$true] %s70_s2 }
  0x28   :  { %s131_s11 = scalar_lea.vmem %s71_s2, 128  ;;  %p136_p3 = scmp.lt.s32.totalorder %s71_s2, %s71_s2 }
  0x29   :  { %p132_p2 = scmp.ne.s32.totalorder %s71_s2, %s131_s11  ;;  %p137_p4 = scmp.lt.s32.totalorder %s131_s11, %s131_s11 }
  0x2b   :  { %p138_p5 = por %p137_p4, %p136_p3 }
  0x2d   :  { %p139_p6 = pnand %p138_p5, %p132_p2 }
  0x30   :  { %v86_v3 = vpop.eup %85 }
  0x31   :  { %v43_v4 = vmul.f32 %v86_v3, %v41_v1 }
  0x33   :  { %vm44_vm0 = vcmp.ne.f32.partialorder %v43_v4, %v43_v4  ;;  %vm45_vm1 = vcmp.eq.f32.partialorder %v43_v4, inf }
  0x34   :  { %vm46_vm2 = vmor %vm44_vm0, %vm45_vm1 }
  0x35   :  { %v47_v6 = vsel %vm46_vm2, 0.0, %v43_v4 }
  0x36   :  { %v49_v7 = vmul.f32 %v48_v5, %v47_v6 }
  0x38   :  { %v50_v8 = vand.u32 2147483647, %v49_v7 }
  0x3a   :  { %v52_v9 = vsel %vm51_vm3, %v50_v8, 0.0 }
  0x3b   :  { %53 = vadd.xlane.f32.xlu0 %v52_v9 }
  0xc8   :  { %v54_v10 = vpop.xlane.xlu0 %53 }
  0xc9   :  { %v55_v11 = vrot.slane %v54_v10, 4 }
  0xcb   :  { %v56_v12 = vadd.f32 %v55_v11, %v54_v10 }
  0xcd   :  { %v57_v13 = vrot.slane %v56_v12, 2 }
  0xcf   :  { %v58_v14 = vadd.f32 %v57_v13, %v56_v12 }
  0xd1   :  { %v59_v15 = vrot.slane %v58_v14, 1 }
  0xd3   :  { %v60_v16 = vadd.f32 %v59_v15, %v58_v14 }
  0xd5   :  { %80 = vpush %v60_v16 }
 0x106   :  { %s81_s10 = spop %80 }
 0x107   :  { %v62_v17 = vstv %s81_s10 }
 0x108   :  { %63 = vst [vmem:[#allocation7] sm:$0xff] %v62_v17 }
 0x109   :  { %142 = shalt.err (!%p139_p6)
}
 0x10a   :  { %s143_s14 = scalar_lea.hbm %s224_s3, 128 }
 0x10b   :  { %p144_p7 = scmp.ne.s32.totalorder %s224_s3, %s143_s14  ;;  %p147_p8 = scmp.lt.u32.totalorder %s143_s14, %s224_s3 }
 0x10d   :  { %p149_p9 = pnand %p147_p8, %p144_p7 }
 0x10f   :  { %152 = shalt.err (!%p149_p9)
}
 0x110   :  { %73 = dma.vmem_to_hbm [thread:$0]  %s71_s2, 128, %s224_s3, [#allocation4]  }
 0x111   :  { %157 = dma.done.wait [#allocation4], 128  }
 0x112   :  { %158 = vsyncadd [#allocation4], 4294967168 }
 0x113   :  { %77 = vsyncpa [#allocation3], 1 }
 0x114   :  { %78 = vsyncpa [#allocation6], 1 }
 0x115   :  { %79 = vsyncpa [#allocation4], 1 }

</bundles_post_ra>
